<compile_context>
chip_gen: v6e
topology: v6e:2x2x1
jax: 0.10.0
libtpu: 0.0.40
codegen_flags: <defaults>
</compile_context>

<pallas_src>
import math
import jax
import jax.numpy as jnp
from jax.experimental import pallas as pl
from jax.experimental.pallas import tpu as pltpu


def _round_up(x, m):
    return ((x + m - 1) // m) * m


def _generator_kernel(noise_ref, att_ref, w1n_ref, w1a_ref, b1_ref,
                      w2_ref, b2_ref, out_ref):
    """Fused MLP: relu(noise@W1n + att@W1a + b1) -> sigmoid(. @ W2 + b2)."""
    # First layer: concat(noise, att) @ W1 expressed as two partial matmuls
    # against the row-slices of W1 (bf16 operands, f32 accumulation).
    z1 = (jnp.dot(noise_ref[...], w1n_ref[...],
                  preferred_element_type=jnp.float32)
          + jnp.dot(att_ref[...], w1a_ref[...],
                    preferred_element_type=jnp.float32)
          + b1_ref[...])                                   # (tb, hidden) f32
    a1 = jnp.maximum(z1, 0.0).astype(w2_ref.dtype)         # relu, back to bf16

    z2 = jnp.dot(a1, w2_ref[...],
                 preferred_element_type=jnp.float32) + b2_ref[...]

    # sigmoid: exp on the EUP, approx reciprocal also on the EUP slot.
    out_ref[...] = pl.reciprocal(1.0 + jnp.exp(-z2), approx=True)


def generator_forward(noise, att, w1, b1, w2, b2, *, batch_tile=256):
    """Generator forward pass with a fused Pallas kernel.

    noise : (..., noise_size) float    att : (..., att_size) float
    w1 : (noise_size + att_size, hidden)   b1 : (hidden,)
    w2 : (hidden, feature_size)            b2 : (feature_size,)
    Weights are stored transposed vs. PyTorch (in, out) so the kernel does
    x @ W + b on the MXU.
    """
    noise_size = noise.shape[-1]
    att_size = att.shape[-1]
    hidden = w1.shape[1]
    feat = w2.shape[1]
    lead_shape = noise.shape[:-1]

    # Flatten leading dims (handles both the 2-D and 3-D PyTorch paths).
    noise2 = noise.reshape((-1, noise_size))
    att2 = att.reshape((-1, att_size))
    B = noise2.shape[0]

    # bf16 for streamed operands; f32 for biases / accumulation / output.
    cdt = jnp.bfloat16
    noise2 = noise2.astype(cdt)
    att2 = att2.astype(cdt)
    w1n = w1[:noise_size, :].astype(cdt)        # rows matching `noise`
    w1a = w1[noise_size:, :].astype(cdt)        # rows matching `att`
    w2c = w2.astype(cdt)
    b1_2d = b1.reshape(1, hidden).astype(jnp.float32)
    b2_2d = b2.reshape(1, feat).astype(jnp.float32)

    # Batch tiling: fill the MXU (default 256 rows); pad B up to a tile
    # multiple instead of asserting divisibility.
    batch_tile = max(8, _round_up(batch_tile, 8))
    tb = min(batch_tile, _round_up(B, 8))
    B_pad = _round_up(B, tb)
    if B_pad != B:
        pad = B_pad - B
        noise2 = jnp.pad(noise2, ((0, pad), (0, 0)))
        att2 = jnp.pad(att2, ((0, pad), (0, 0)))

    grid = (B_pad // tb,)
    # NOTE(v7x): with a single grid step only one TensorCore is used; large
    # batches naturally give >=2 parallel tiles. Acceptable for the demo.

    d_in = noise_size + att_size
    flops = 2 * B_pad * (d_in * hidden + hidden * feat)
    bytes_accessed = (
        B_pad * d_in * 2                       # noise + att (bf16)
        + (d_in * hidden + hidden * feat) * 2  # W1 + W2 (bf16)
        + (hidden + feat) * 4                  # biases (f32)
        + B_pad * feat * 4                     # output (f32)
    )

    out = pl.pallas_call(
        _generator_kernel,
        out_shape=jax.ShapeDtypeStruct((B_pad, feat), jnp.float32),
        grid_spec=pltpu.PrefetchScalarGridSpec(
            num_scalar_prefetch=0,
            grid=grid,
            in_specs=[
                pl.BlockSpec((tb, noise_size), lambda i: (i, 0)),    # noise
                pl.BlockSpec((tb, att_size), lambda i: (i, 0)),      # att
                pl.BlockSpec((noise_size, hidden), lambda i: (0, 0)),  # W1[:n]
                pl.BlockSpec((att_size, hidden), lambda i: (0, 0)),    # W1[n:]
                pl.BlockSpec((1, hidden), lambda i: (0, 0)),           # b1
                pl.BlockSpec((hidden, feat), lambda i: (0, 0)),        # W2
                pl.BlockSpec((1, feat), lambda i: (0, 0)),             # b2
            ],
            out_specs=pl.BlockSpec((tb, feat), lambda i: (i, 0)),
        ),
        compiler_params=pltpu.CompilerParams(
            dimension_semantics=("parallel",),
        ),
        cost_estimate=pl.CostEstimate(
            flops=flops,
            transcendentals=B_pad * feat,
            bytes_accessed=bytes_accessed,
        ),
    )(noise2, att2, w1n, w1a, b1_2d, w2c, b2_2d)

    out = out[:B]
    return out.reshape(lead_shape + (feat,))
    # TODO(synk): if hidden/feature_size are scaled up (e.g. 8192/4096),
    # add a K/N grid axis for W2 instead of keeping the full weight resident
    # (v7x has 64 MiB VMEM per TC) and set vmem_limit_bytes explicitly.


def init_generator_params(key, feature_size, att_size, hidden=1024):
    """Deterministic xavier_normal_ weights + zero biases (PyTorch init)."""
    k1, k2 = jax.random.split(key)
    d_in1, d_out1 = 2 * att_size, hidden
    d_in2, d_out2 = hidden, feature_size
    std1 = math.sqrt(2.0 / (d_in1 + d_out1))
    std2 = math.sqrt(2.0 / (d_in2 + d_out2))
    # stored as (in, out) so kernel computes x @ W
    w1 = std1 * jax.random.normal(k1, (d_in1, d_out1), dtype=jnp.float32)
    w2 = std2 * jax.random.normal(k2, (d_in2, d_out2), dtype=jnp.float32)
    b1 = jnp.zeros((d_out1,), dtype=jnp.float32)
    b2 = jnp.zeros((d_out2,), dtype=jnp.float32)
    return w1, b1, w2, b2


if __name__ == "__main__":
    # Small shapes consistent with the module's forward:
    #   att_size=64 -> fc1 input = 128, hidden = 1024 (hardcoded in module),
    #   feature_size=256. Batch=10 exercises the non-divisible/padded path.
    ATT_SIZE = 64
    FEATURE_SIZE = 256
    HIDDEN = 1024
    BATCH = 10

    key = jax.random.PRNGKey(0)
    k_noise, k_att, k_params = jax.random.split(key, 3)

    noise = jax.random.normal(k_noise, (BATCH, ATT_SIZE), dtype=jnp.float32)
    att = jax.random.normal(k_att, (BATCH, ATT_SIZE), dtype=jnp.float32)

    w1, b1, w2, b2 = init_generator_params(k_params, FEATURE_SIZE, ATT_SIZE, HIDDEN)

    out = generator_forward(noise, att, w1, b1, w2, b2)
    jax.block_until_ready(out)

    # Reference in plain f32 JAX (same math, no Pallas). Tolerance is loosened
    # for the bf16 operands + approx reciprocal in the kernel.
    h = jnp.concatenate((noise, att), axis=-1)
    ref = jax.nn.sigmoid(jnp.maximum(h @ w1 + b1, 0.0) @ w2 + b2)
    assert out.shape == (BATCH, FEATURE_SIZE)
    assert jnp.allclose(out, ref, atol=2e-2, rtol=2e-2), \
        float(jnp.max(jnp.abs(out - ref)))

    print("KERNEL_OK")
</pallas_src>

<mosaic_0001>
module attributes {stable_mosaic.version = 11 : i64} {
  func.func @_generator_kernel(%arg0: i32, %arg1: memref<16x64xbf16, #tpu.memory_space<vmem>>, %arg2: memref<16x64xbf16, #tpu.memory_space<vmem>>, %arg3: memref<64x1024xbf16, #tpu.memory_space<vmem>>, %arg4: memref<64x1024xbf16, #tpu.memory_space<vmem>>, %arg5: memref<1x1024xf32, #tpu.memory_space<vmem>>, %arg6: memref<1024x256xbf16, #tpu.memory_space<vmem>>, %arg7: memref<1x256xf32, #tpu.memory_space<vmem>>, %arg8: memref<16x256xf32, #tpu.memory_space<vmem>>) attributes {dimension_semantics = [#tpu.dimension_semantics<parallel>], iteration_bounds = array<i64: 1>, scalar_prefetch = 0 : i64, scratch_operands = 0 : i64, tpu.core_type = #tpu.core_type<tc>, window_params = [{transform_indices = @transform_0, window_bounds = array<i64: 16, 64>}, {transform_indices = @transform_1, window_bounds = array<i64: 16, 64>}, {pipeline_mode = #tpu.pipeline_mode<synchronous>, transform_indices = @transform_2, window_bounds = array<i64: 64, 1024>}, {pipeline_mode = #tpu.pipeline_mode<synchronous>, transform_indices = @transform_3, window_bounds = array<i64: 64, 1024>}, {pipeline_mode = #tpu.pipeline_mode<synchronous>, transform_indices = @transform_4, window_bounds = array<i64: 1, 1024>}, {pipeline_mode = #tpu.pipeline_mode<synchronous>, transform_indices = @transform_5, window_bounds = array<i64: 1024, 256>}, {pipeline_mode = #tpu.pipeline_mode<synchronous>, transform_indices = @transform_6, window_bounds = array<i64: 1, 256>}, {transform_indices = @transform_7, window_bounds = array<i64: 16, 256>}]} {
    %c0 = arith.constant 0 : index
    %c0_0 = arith.constant 0 : index
    %0 = vector.load %arg1[%c0, %c0_0] : memref<16x64xbf16, #tpu.memory_space<vmem>>, vector<16x64xbf16>
    %c0_1 = arith.constant 0 : index
    %c0_2 = arith.constant 0 : index
    %1 = vector.load %arg3[%c0_1, %c0_2] : memref<64x1024xbf16, #tpu.memory_space<vmem>>, vector<64x1024xbf16>
    %cst = arith.constant dense<0.000000e+00> : vector<16x1024xf32>
    %2 = tpu.matmul %0, %1, %cst {dimension_numbers = #tpu.dot_dimension_numbers<[1], [0], [0], [1], [0, 0, 1, 1], [], []>} : vector<16x64xbf16>, vector<64x1024xbf16>, vector<16x1024xf32> -> vector<16x1024xf32>
    %c0_3 = arith.constant 0 : index
    %c0_4 = arith.constant 0 : index
    %3 = vector.load %arg2[%c0_3, %c0_4] : memref<16x64xbf16, #tpu.memory_space<vmem>>, vector<16x64xbf16>
    %c0_5 = arith.constant 0 : index
    %c0_6 = arith.constant 0 : index
    %4 = vector.load %arg4[%c0_5, %c0_6] : memref<64x1024xbf16, #tpu.memory_space<vmem>>, vector<64x1024xbf16>
    %cst_7 = arith.constant dense<0.000000e+00> : vector<16x1024xf32>
    %5 = tpu.matmul %3, %4, %cst_7 {dimension_numbers = #tpu.dot_dimension_numbers<[1], [0], [0], [1], [0, 0, 1, 1], [], []>} : vector<16x64xbf16>, vector<64x1024xbf16>, vector<16x1024xf32> -> vector<16x1024xf32>
    %6 = arith.addf %2, %5 : vector<16x1024xf32>
    %c0_8 = arith.constant 0 : index
    %c0_9 = arith.constant 0 : index
    %7 = vector.load %arg5[%c0_8, %c0_9] : memref<1x1024xf32, #tpu.memory_space<vmem>>, vector<1x1024xf32>
    %8 = vector.broadcast %7 : vector<1x1024xf32> to vector<16x1024xf32>
    %9 = arith.addf %6, %8 : vector<16x1024xf32>
    %cst_10 = arith.constant 0.000000e+00 : f32
    %10 = vector.broadcast %cst_10 : f32 to vector<16x1024xf32>
    %11 = arith.maximumf %9, %10 : vector<16x1024xf32>
    %12 = arith.truncf %11 : vector<16x1024xf32> to vector<16x1024xbf16>
    %c0_11 = arith.constant 0 : index
    %c0_12 = arith.constant 0 : index
    %13 = vector.load %arg6[%c0_11, %c0_12] : memref<1024x256xbf16, #tpu.memory_space<vmem>>, vector<1024x256xbf16>
    %cst_13 = arith.constant dense<0.000000e+00> : vector<16x256xf32>
    %14 = tpu.matmul %12, %13, %cst_13 {dimension_numbers = #tpu.dot_dimension_numbers<[1], [0], [0], [1], [0, 0, 1, 1], [], []>} : vector<16x1024xbf16>, vector<1024x256xbf16>, vector<16x256xf32> -> vector<16x256xf32>
    %c0_14 = arith.constant 0 : index
    %c0_15 = arith.constant 0 : index
    %15 = vector.load %arg7[%c0_14, %c0_15] : memref<1x256xf32, #tpu.memory_space<vmem>>, vector<1x256xf32>
    %16 = vector.broadcast %15 : vector<1x256xf32> to vector<16x256xf32>
    %17 = arith.addf %14, %16 : vector<16x256xf32>
    %cst_16 = arith.constant 0.000000e+00 : f32
    %18 = vector.broadcast %cst_16 : f32 to vector<16x256xf32>
    %19 = arith.subf %18, %17 : vector<16x256xf32>
    %20 = math.exp %19 : vector<16x256xf32>
    %cst_17 = arith.constant 1.000000e+00 : f32
    %21 = vector.broadcast %cst_17 : f32 to vector<16x256xf32>
    %22 = arith.addf %21, %20 : vector<16x256xf32>
    %23 = tpu.reciprocal %22 {approx = true} : vector<16x256xf32> -> vector<16x256xf32>
    %c0_18 = arith.constant 0 : index
    %c0_19 = arith.constant 0 : index
    %24 = vector.load %arg8[%c0_18, %c0_19] : memref<16x256xf32, #tpu.memory_space<vmem>>, vector<16x256xf32>
    tpu.vector_store %arg8[%c0_18, %c0_19], %23 {strides = array<i32>} : memref<16x256xf32, #tpu.memory_space<vmem>>, vector<16x256xf32>,
    return
  }
  func.func @transform_0(%arg0: i32) -> (i32, i32) {
    %c0_i32 = arith.constant 0 : i32
    %c0_i32_0 = arith.constant 0 : i32
    return %arg0, %c0_i32 : i32, i32
  }
  func.func @transform_1(%arg0: i32) -> (i32, i32) {
    %c0_i32 = arith.constant 0 : i32
    %c0_i32_0 = arith.constant 0 : i32
    return %arg0, %c0_i32 : i32, i32
  }
  func.func @transform_2(%arg0: i32) -> (i32, i32) {
    %c0_i32 = arith.constant 0 : i32
    %c0_i32_0 = arith.constant 0 : i32
    %c0_i32_1 = arith.constant 0 : i32
    return %c0_i32, %c0_i32_0 : i32, i32
  }
  func.func @transform_3(%arg0: i32) -> (i32, i32) {
    %c0_i32 = arith.constant 0 : i32
    %c0_i32_0 = arith.constant 0 : i32
    %c0_i32_1 = arith.constant 0 : i32
    return %c0_i32, %c0_i32_0 : i32, i32
  }
  func.func @transform_4(%arg0: i32) -> (i32, i32) {
    %c0_i32 = arith.constant 0 : i32
    %c0_i32_0 = arith.constant 0 : i32
    %c0_i32_1 = arith.constant 0 : i32
    return %c0_i32, %c0_i32_0 : i32, i32
  }
  func.func @transform_5(%arg0: i32) -> (i32, i32) {
    %c0_i32 = arith.constant 0 : i32
    %c0_i32_0 = arith.constant 0 : i32
    %c0_i32_1 = arith.constant 0 : i32
    return %c0_i32, %c0_i32_0 : i32, i32
  }
  func.func @transform_6(%arg0: i32) -> (i32, i32) {
    %c0_i32 = arith.constant 0 : i32
    %c0_i32_0 = arith.constant 0 : i32
    %c0_i32_1 = arith.constant 0 : i32
    return %c0_i32, %c0_i32_0 : i32, i32
  }
  func.func @transform_7(%arg0: i32) -> (i32, i32) {
    %c0_i32 = arith.constant 0 : i32
    %c0_i32_0 = arith.constant 0 : i32
    return %arg0, %c0_i32 : i32, i32
  }
}

</mosaic_0001>

<bundles_post_ra>
// kernel: tpu_custom_call.1
= control target key start
LH: loop header
LB: loop body
LE: loop exit
PB: predicated region body
PF: predicated region fallthrough
CT: control target
= control target key end

     0   :  { %12 = vsyncpa [#allocation3], 0  ;;  %s2678_s0 = inlined_call_operand.hbm [shape: bf16[16,64], index: 0, kind: input, shape index: {}]   ;;  %s2679_s1 = inlined_call_operand.hbm [shape: bf16[16,64], index: 1, kind: input, shape index: {}]   ;;  %s2680_s2 = inlined_call_operand.hbm [shape: bf16[64,1024], index: 2, kind: input, shape index: {}]   ;;  %s2681_s3 = inlined_call_operand.hbm [shape: bf16[64,1024], index: 3, kind: input, shape index: {}]   ;;  %s2682_s4 = inlined_call_operand.hbm [shape: f32[1,1024], index: 4, kind: input, shape index: {}]   ;;  %s2683_s5 = inlined_call_operand.hbm [shape: bf16[1024,256], index: 5, kind: input, shape index: {}]   ;;  %s2684_s6 = inlined_call_operand.vmem [shape: f32[1,256], index: 6, kind: input, shape index: {}]   ;;  %s2685_s7 = inlined_call_operand.hbm [shape: f32[16,256], index: 7, kind: output, shape index: {}]  }
   0x1   :  { %13 = vsyncpa [#allocation6], 0 }
   0x2   :  { %14 = vsyncpa [#allocation9], 0 }
   0x3   :  { %15 = vsyncpa [#allocation12], 0 }
   0x4   :  { %16 = vsyncpa [#allocation4], 0  ;;  %s2513_s24 = smov [#allocation5]  }
   0x5   :  { %s34_s25 = sshll.u32 %s2513_s24, 4  ;;  %s35_s25 = int_to_ptr.vmem [resolvable:$true] %s34_s25 }
   0x6   :  { %s2371_s26 = scalar_lea.vmem %s35_s25, 128  ;;  %p2376_p1 = scmp.lt.s32.totalorder %s35_s25, %s35_s25 }
   0x7   :  { %p2372_p0 = scmp.ne.s32.totalorder %s35_s25, %s2371_s26  ;;  %p2377_p2 = scmp.lt.s32.totalorder %s2371_s26, %s2371_s26 }
   0x9   :  { %p2378_p3 = por %p2377_p2, %p2376_p1 }
   0xb   :  { %p2379_p4 = pnand %p2378_p3, %p2372_p0 }
   0xd   :  { %2382 = shalt.err (!%p2379_p4)
}
   0xe   :  { %s2514_s27 = smov 64   ;;  %s2515_s28 = smov 4  }
   0xf   :  { %40 = dma.hbm_to_vmem [thread:$0]  %s2679_s1, 128, %s35_s25, [#allocation6], %s2514_s27, %s2514_s27, %s2515_s28  }
  0x10   :  { %s2516_s8 = smov [#allocation8]   ;;  %s2517_s10 = smov [#allocation2]  }
  0x11   :  { %s58_s9 = sshll.u32 %s2516_s8, 4  ;;  %s22_s11 = sshll.u32 %s2517_s10, 4  ;;  %s59_s9 = int_to_ptr.vmem [resolvable:$true] %s58_s9  ;;  %s23_s11 = int_to_ptr.vmem [resolvable:$true] %s22_s11 }
  0x12   :  { %s2391_s12 = scalar_lea.vmem %s59_s9, 4096  ;;  %p2396_p6 = scmp.lt.s32.totalorder %s59_s9, %s59_s9 }
  0x13   :  { %p2392_p5 = scmp.ne.s32.totalorder %s59_s9, %s2391_s12  ;;  %p2397_p7 = scmp.lt.s32.totalorder %s2391_s12, %s2391_s12 }
  0x15   :  { %p2398_p8 = por %p2397_p7, %p2396_p6 }
  0x17   :  { %p2399_p9 = pnand %p2398_p8, %p2392_p5 }
  0x19   :  { %2402 = shalt.err (!%p2399_p9)
}
  0x1a   :  { %s2518_s13 = smov 512   ;;  %s2519_s14 = smov 32  }
  0x1b   :  { %64 = dma.hbm_to_vmem [thread:$0]  %s2681_s3, 4096, %s59_s9, [#allocation9], %s2518_s13, %s2518_s13, %s2519_s14  }
  0x1c   :  { %s2411_s1 = scalar_lea.vmem %s23_s11, 128  ;;  %p2416_p11 = scmp.lt.s32.totalorder %s23_s11, %s23_s11 }
  0x1d   :  { %p2412_p10 = scmp.ne.s32.totalorder %s23_s11, %s2411_s1  ;;  %p2417_p12 = scmp.lt.s32.totalorder %s2411_s1, %s2411_s1 }
  0x1f   :  { %p2418_p13 = por %p2417_p12, %p2416_p11 }
  0x21   :  { %p2419_p0 = pnand %p2418_p13, %p2412_p10 }
  0x23   :  { %2422 = shalt.err (!%p2419_p0)
}
  0x24   :  { %28 = dma.hbm_to_vmem [thread:$0]  %s2678_s0, 128, %s23_s11, [#allocation3], %s2514_s27, %s2514_s27, %s2515_s28  }
  0x25   :  { %s2520_s19 = smov [#allocation7]   ;;  %s2521_s21 = smov [#allocation10]  }
  0x26   :  { %s46_s20 = sshll.u32 %s2520_s19, 4  ;;  %s71_s22 = sshll.u32 %s2521_s21, 4  ;;  %s47_s20 = int_to_ptr.vmem [resolvable:$true] %s46_s20  ;;  %s72_s22 = int_to_ptr.vmem [resolvable:$true] %s71_s22 }
  0x27   :  { %s2431_s23 = scalar_lea.vmem %s47_s20, 4096  ;;  %p2436_p2 = scmp.lt.s32.totalorder %s47_s20, %s47_s20 }
  0x28   :  { %p2432_p1 = scmp.ne.s32.totalorder %s47_s20, %s2431_s23  ;;  %p2437_p3 = scmp.lt.s32.totalorder %s2431_s23, %s2431_s23 }
  0x2a   :  { %p2438_p4 = por %p2437_p3, %p2436_p2 }
  0x2c   :  { %p2439_p5 = pnand %p2438_p4, %p2432_p1 }
  0x2e   :  { %2442 = shalt.err (!%p2439_p5)
}
  0x2f   :  { %52 = dma.hbm_to_vmem [thread:$0]  %s2680_s2, 4096, %s47_s20, [#allocation6], %s2518_s13, %s2518_s13, %s2519_s14  }
  0x30   :  { %s2451_s25 = scalar_lea.vmem %s72_s22, 128  ;;  %p2456_p7 = scmp.lt.s32.totalorder %s72_s22, %s72_s22 }
  0x31   :  { %p2452_p6 = scmp.ne.s32.totalorder %s72_s22, %s2451_s25  ;;  %p2457_p8 = scmp.lt.s32.totalorder %s2451_s25, %s2451_s25 }
  0x33   :  { %p2458_p9 = por %p2457_p8, %p2456_p7 }
  0x35   :  { %p2459_p10 = pnand %p2458_p9, %p2452_p6 }
  0x37   :  { %2462 = shalt.err (!%p2459_p10)
}
  0x38   :  { %74 = dma.hbm_to_vmem [thread:$0]  %s2682_s4, 128, %s72_s22, [#allocation9]  }
  0x39   :  { %s2522_s27 = smov [#allocation11]  }
  0x3a   :  { %s80_s28 = sshll.u32 %s2522_s27, 4  ;;  %s81_s28 = int_to_ptr.vmem [resolvable:$true] %s80_s28 }
  0x3b   :  { %s2471_s29 = scalar_lea.vmem %s81_s28, 16384  ;;  %p2476_p12 = scmp.lt.s32.totalorder %s81_s28, %s81_s28 }
  0x3c   :  { %p2472_p11 = scmp.ne.s32.totalorder %s81_s28, %s2471_s29  ;;  %p2477_p13 = scmp.lt.s32.totalorder %s2471_s29, %s2471_s29 }
  0x3e   :  { %p2478_p0 = por %p2477_p13, %p2476_p12 }
  0x40   :  { %p2479_p1 = pnand %p2478_p0, %p2472_p11 }
  0x42   :  { %2482 = shalt.err (!%p2479_p1)
}
  0x43   :  { %s2523_s2 = smov 128   ;;  %s2524_s30 = smov 8  }
  0x44   :  { %86 = dma.hbm_to_vmem [thread:$0]  %s2683_s5, 16384, %s81_s28, [#allocation12], %s2523_s2, %s2523_s2, %s2524_s30  }
  0x45   :  { %2503 = dma.done.wait [#allocation3], 128  }
  0x46   :  { %2504 = vsyncadd [#allocation3], 4294967168 }
  0x47   :  { %2505 = dma.done.wait [#allocation6], 4224  }
  0x48   :  { %2506 = vsyncadd [#allocation6], 4294963072 }
  0x49   :  { %2507 = dma.done.wait [#allocation9], 4224  }
  0x4a   :  { %2508 = vsyncadd [#allocation9], 4294963072 }
  0x4b   :  { %2509 = dma.done.wait [#allocation12], 16384  }
  0x4c   :  { %2510 = vsyncadd [#allocation12], 4294950912  ;;  %v2525_v0 = vmov 0   ;;  %v168_v1 = vld [vmem:[#allocation8 + $0xc0] sm:$0xff]  ;;  %v169_v3 = vld [vmem:[#allocation8 + $0xc8] sm:$0xff]  ;;  %vm341_vm0 = vcmask 523264  }
  0x4d   :  { %377 = vmatprep.mubr.bf16.mxu0 %v2525_v0  ;;  %420 = vmatprep.mubr.bf16.mxu1 %v2525_v0  ;;  %v172_v2 = vld [vmem:[#allocation8 + $0xe0] sm:$0xff]  ;;  %v173_v5 = vld [vmem:[#allocation8 + $0xe8] sm:$0xff]  ;;  %v170_v31 = vld [vmem:[#allocation8 + $0xd0] sm:$0xff] }
  0x4e   :  { %v1961_v4 = vcombine.high %v168_v1, %v172_v2  ;;  %v1960_v6 = vcombine.low %v168_v1, %v172_v2  ;;  %v160_v7 = vld [vmem:[#allocation8 + $0x80] sm:$0xff]  ;;  %v1963_v9 = vcombine.high %v169_v3, %v173_v5  ;;  %v1962_v10 = vcombine.low %v169_v3, %v173_v5  ;;  %v161_v12 = vld [vmem:[#allocation8 + $0x88] sm:$0xff]  ;;  %v174_v32 = vld [vmem:[#allocation8 + $0xf0] sm:$0xff] }
  0x4f   :  { %v164_v8 = vld [vmem:[#allocation8 + $0xa0] sm:$0xff]  ;;  %v165_v13 = vld [vmem:[#allocation8 + $0xa8] sm:$0xff]  ;;  %v171_v33 = vld [vmem:[#allocation8 + $0xd8] sm:$0xff]  ;;  %v1965_v37 = vcombine.high %v170_v31, %v174_v32  ;;  %v1964_v44 = vcombine.low %v170_v31, %v174_v32 }
  0x50   :  { %v1953_v11 = vcombine.high %v160_v7, %v164_v8  ;;  %v152_v14 = vld [vmem:[#allocation8 + $0x40] sm:$0xff]  ;;  %353 = vmatprep.subr.bf16.mxu0 %v1961_v4  ;;  %v1955_v15 = vcombine.high %v161_v12, %v165_v13  ;;  %v153_v17 = vld [vmem:[#allocation8 + $0x48] sm:$0xff]  ;;  %396 = vmatprep.subr.bf16.mxu1 %v1963_v9  ;;  %v1952_v19 = vcombine.low %v160_v7, %v164_v8  ;;  %v175_v34 = vld [vmem:[#allocation8 + $0xf8] sm:$0xff] }
  0x51   :  { %v156_v16 = vld [vmem:[#allocation8 + $0x60] sm:$0xff]  ;;  %v157_v18 = vld [vmem:[#allocation8 + $0x68] sm:$0xff]  ;;  %354 = vmatpush1.bf16.msra.mxu0 %v1960_v6  ;;  %397 = vmatpush1.bf16.msra.mxu1 %v1962_v10  ;;  %v1954_v20 = vcombine.low %v161_v12, %v165_v13  ;;  %v1967_v38 = vcombine.high %v171_v33, %v175_v34  ;;  %v162_v39 = vld [vmem:[#allocation8 + $0x90] sm:$0xff]  ;;  %v1966_v45 = vcombine.low %v171_v33, %v175_v34 }
  0x52   :  { %355 = vmatprep.subr.bf16.mxu0 %v1953_v11  ;;  %v1945_v21 = vcombine.high %v152_v14, %v156_v16  ;;  %398 = vmatprep.subr.bf16.mxu1 %v1955_v15  ;;  %v1947_v22 = vcombine.high %v153_v17, %v157_v18  ;;  %v144_v23 = vld [vmem:[#allocation8] sm:$0xff]  ;;  %v145_v25 = vld [vmem:[#allocation8 + $0x8] sm:$0xff]  ;;  %v1944_v27 = vcombine.low %v152_v14, %v156_v16  ;;  %v166_v40 = vld [vmem:[#allocation8 + $0xb0] sm:$0xff] }
  0x53   :  { %v148_v24 = vld [vmem:[#allocation8 + $0x20] sm:$0xff]  ;;  %v149_v26 = vld [vmem:[#allocation8 + $0x28] sm:$0xff]  ;;  %v1946_v28 = vcombine.low %v153_v17, %v157_v18  ;;  %v2589_v41 = vld [vmem:[#allocation5] sm:$0xff]   ;;  %v1957_v46 = vcombine.high %v162_v39, %v166_v40  ;;  %v1956_v52 = vcombine.low %v162_v39, %v166_v40 }
  0x54   :  { %v1937_v29 = vcombine.high %v144_v23, %v148_v24  ;;  %v1939_v30 = vcombine.high %v145_v25, %v149_v26  ;;  %v1936_v35 = vcombine.low %v144_v23, %v148_v24  ;;  %v1938_v36 = vcombine.low %v145_v25, %v149_v26  ;;  %v163_v42 = vld [vmem:[#allocation8 + $0x98] sm:$0xff]  ;;  %v154_v48 = vld [vmem:[#allocation8 + $0x50] sm:$0xff]  ;;  %v134_v63 = vld [vmem:[#allocation7 + $0xc0] sm:$0xff] }
  0x55   :  { %356 = vmatpush1.bf16.msra.mxu0 %v1952_v19  ;;  %399 = vmatpush1.bf16.msra.mxu1 %v1954_v20  ;;  %v167_v43 = vld [vmem:[#allocation8 + $0xb8] sm:$0xff]  ;;  %v158_v49 = vld [vmem:[#allocation8 + $0x70] sm:$0xff]  ;;  %v138_v1 = vld [vmem:[#allocation7 + $0xe0] sm:$0xff] }
  0x56   :  { %357 = vmatprep.subr.bf16.mxu0 %v1945_v21  ;;  %400 = vmatprep.subr.bf16.mxu1 %v1947_v22  ;;  %v1959_v47 = vcombine.high %v163_v42, %v167_v43  ;;  %v155_v50 = vld [vmem:[#allocation8 + $0x58] sm:$0xff]  ;;  %v1958_v53 = vcombine.low %v163_v42, %v167_v43  ;;  %v1949_v54 = vcombine.high %v154_v48, %v158_v49  ;;  %v146_v56 = vld [vmem:[#allocation8 + $0x10] sm:$0xff]  ;;  %v135_v3 = vld [vmem:[#allocation7 + $0xc8] sm:$0xff] }
  0x57   :  { %v159_v51 = vld [vmem:[#allocation8 + $0x78] sm:$0xff]  ;;  %v150_v57 = vld [vmem:[#allocation8 + $0x30] sm:$0xff]  ;;  %v1948_v60 = vcombine.low %v154_v48, %v158_v49  ;;  %v139_v4 = vld [vmem:[#allocation7 + $0xe8] sm:$0xff]  ;;  %v1998_v7 = vcombine.high %v134_v63, %v138_v1  ;;  %v1997_v13 = vcombine.low %v134_v63, %v138_v1 }
  0x58   :  { %v1951_v55 = vcombine.high %v155_v50, %v159_v51  ;;  %v147_v58 = vld [vmem:[#allocation8 + $0x18] sm:$0xff]  ;;  %v1950_v61 = vcombine.low %v155_v50, %v159_v51  ;;  %v1941_v62 = vcombine.high %v146_v56, %v150_v57  ;;  %v1940_v5 = vcombine.low %v146_v56, %v150_v57  ;;  %v126_v8 = vld [vmem:[#allocation7 + $0x80] sm:$0xff]  ;;  %v127_v11 = vld [vmem:[#allocation7 + $0x88] sm:$0xff] }
  0x59   :  { %358 = vmatpush1.bf16.msra.mxu0 %v1944_v27  ;;  %401 = vmatpush1.bf16.msra.mxu1 %v1946_v28  ;;  %v151_v59 = vld [vmem:[#allocation8 + $0x38] sm:$0xff]  ;;  %v130_v9 = vld [vmem:[#allocation7 + $0xa0] sm:$0xff]  ;;  %v2000_v10 = vcombine.high %v135_v3, %v139_v4  ;;  %v131_v12 = vld [vmem:[#allocation7 + $0xa8] sm:$0xff]  ;;  %v1999_v14 = vcombine.low %v135_v3, %v139_v4 }
  0x5a   :  { %359 = vmatprep.subr.bf16.mxu0 %v1937_v29  ;;  %402 = vmatprep.subr.bf16.mxu1 %v1939_v30  ;;  %v1943_v2 = vcombine.high %v147_v58, %v151_v59  ;;  %v1942_v6 = vcombine.low %v147_v58, %v151_v59  ;;  %v1990_v15 = vcombine.high %v126_v8, %v130_v9  ;;  %v118_v16 = vld [vmem:[#allocation7 + $0x40] sm:$0xff]  ;;  %v119_v19 = vld [vmem:[#allocation7 + $0x48] sm:$0xff]  ;;  %v136_v30 = vld [vmem:[#allocation7 + $0xd0] sm:$0xff] }
  0x5b   :  { %v122_v17 = vld [vmem:[#allocation7 + $0x60] sm:$0xff]  ;;  %v1992_v18 = vcombine.high %v127_v11, %v131_v12  ;;  %v123_v20 = vld [vmem:[#allocation7 + $0x68] sm:$0xff]  ;;  %v1989_v21 = vcombine.low %v126_v8, %v130_v9  ;;  %v1991_v24 = vcombine.low %v127_v11, %v131_v12  ;;  %v140_v31 = vld [vmem:[#allocation7 + $0xf0] sm:$0xff] }
  0x5c   :  { %v110_v22 = vld [vmem:[#allocation7] sm:$0xff]  ;;  %v1982_v25 = vcombine.high %v118_v16, %v122_v17  ;;  %v111_v26 = vld [vmem:[#allocation7 + $0x8] sm:$0xff]  ;;  %v1984_v28 = vcombine.high %v119_v19, %v123_v20  ;;  %v1981_v29 = vcombine.low %v118_v16, %v122_v17  ;;  %v1983_v32 = vcombine.low %v119_v19, %v123_v20  ;;  %v137_v34 = vld [vmem:[#allocation7 + $0xd8] sm:$0xff] }
  0x5d   :  { %360 = vmatpush1.bf16.msra.mxu0 %v1936_v35  ;;  %403 = vmatpush1.bf16.msra.mxu1 %v1938_v36  ;;  %v114_v23 = vld [vmem:[#allocation7 + $0x20] sm:$0xff]  ;;  %v115_v27 = vld [vmem:[#allocation7 + $0x28] sm:$0xff]  ;;  %v141_v35 = vld [vmem:[#allocation7 + $0xf8] sm:$0xff]  ;;  %v2002_v42 = vcombine.high %v136_v30, %v140_v31 }
  0x5e   :  { %439 = vmatprep.subr.bf16.mxu0 %v1965_v37  ;;  %482 = vmatprep.subr.bf16.mxu1 %v1967_v38  ;;  %v1974_v33 = vcombine.high %v110_v22, %v114_v23  ;;  %v1976_v36 = vcombine.high %v111_v26, %v115_v27  ;;  %v1973_v37 = vcombine.low %v110_v22, %v114_v23  ;;  %v128_v38 = vld [vmem:[#allocation7 + $0x90] sm:$0xff]  ;;  %v129_v43 = vld [vmem:[#allocation7 + $0x98] sm:$0xff] }
  0x5f   :  { %v132_v39 = vld [vmem:[#allocation7 + $0xb0] sm:$0xff]  ;;  %v1975_v40 = vcombine.low %v111_v26, %v115_v27  ;;  %v2003_v49 = vcombine.low %v137_v34, %v141_v35  ;;  %v121_v51 = vld [vmem:[#allocation7 + $0x58] sm:$0xff] }
  0x60   :  { %1968 = vmatmul.mubr.msk.bf16.vlgmr.msra.gmra.mxu0 %vm341_vm0, %v2589_v41  ;;  %1969 = vmatmul.mubr.msk.bf16.vlgmr.msra.gmra.mxu1 %vm341_vm0, %v2589_v41  ;;  %v124_v48 = vld [vmem:[#allocation7 + $0x70] sm:$0xff]  ;;  %v1994_v50 = vcombine.high %v128_v38, %v132_v39  ;;  %v113_v59 = vld [vmem:[#allocation7 + $0x18] sm:$0xff] }
  0x61   :  { %440 = vmatpush1.bf16.msra.mxu0 %v1964_v44  ;;  %483 = vmatpush1.bf16.msra.mxu1 %v1966_v45  ;;  %v133_v44 = vld [vmem:[#allocation7 + $0xb8] sm:$0xff]  ;;  %v2004_v45 = vcombine.high %v137_v34, %v141_v35  ;;  %v116_v56 = vld [vmem:[#allocation7 + $0x30] sm:$0xff] }
  0x62   :  { %441 = vmatprep.subr.bf16.mxu0 %v1957_v46  ;;  %484 = vmatprep.subr.bf16.mxu1 %v1959_v47  ;;  %v2001_v46 = vcombine.low %v136_v30, %v140_v31  ;;  %v120_v47 = vld [vmem:[#allocation7 + $0x50] sm:$0xff]  ;;  %v1995_v57 = vcombine.low %v129_v43, %v133_v44  ;;  %v2157_v3 = vld [vmem:[#allocation11 + $0x74] ss:$8 sps:$4 sm:$0xff]   ;;  %v2158_v8 = vld [vmem:[#allocation11 + $0x170] ss:$8 sps:$4 sm:$0xff]  }
  0x63   :  { %463 = vmatprep.mubr.bf16.mxu0 %v2525_v0  ;;  %506 = vmatprep.mubr.bf16.mxu1 %v2525_v0  ;;  %v1986_v58 = vcombine.high %v120_v47, %v124_v48  ;;  %v2163_v9 = vld [vmem:[#allocation11 + $0x64] ss:$8 sps:$4 sm:$0xff]   ;;  %v2164_v11 = vld [vmem:[#allocation11 + $0x160] ss:$8 sps:$4 sm:$0xff]   ;;  %v2169_v12 = vld [vmem:[#allocation11 + $0x54] ss:$8 sps:$4 sm:$0xff]  }
  0x64   :  { %v2175_v16 = vld [vmem:[#allocation11 + $0x44] ss:$8 sps:$4 sm:$0xff]   ;;  %v2176_v19 = vld [vmem:[#allocation11 + $0x140] ss:$8 sps:$4 sm:$0xff]   ;;  %v2181_v20 = vld [vmem:[#allocation11 + $0x34] ss:$8 sps:$4 sm:$0xff]  }
  0x65   :  { %442 = vmatpush1.bf16.msra.mxu0 %v1956_v52  ;;  %485 = vmatpush1.bf16.msra.mxu1 %v1958_v53  ;;  %v125_v52 = vld [vmem:[#allocation7 + $0x78] sm:$0xff]  ;;  %v1996_v53 = vcombine.high %v129_v43, %v133_v44  ;;  %v2178_v17 = vld [vmem:[#allocation11 + $0x144] ss:$8 sps:$4 sm:$0xff]   ;;  %v2185_v26 = vld [vmem:[#allocation11 + $0x20] ss:$8 sps:$4 sm:$0xff]  }
  0x66   :  { %443 = vmatprep.subr.bf16.mxu0 %v1949_v54  ;;  %486 = vmatprep.subr.bf16.mxu1 %v1951_v55  ;;  %v1993_v54 = vcombine.low %v128_v38, %v132_v39  ;;  %v112_v55 = vld [vmem:[#allocation7 + $0x10] sm:$0xff]  ;;  %v1987_v63 = vcombine.low %v121_v51, %v125_v52  ;;  %v2179_v22 = vld [vmem:[#allocation11 + $0x30] ss:$8 sps:$4 sm:$0xff]   ;;  %v2217_v44 = vld [vmem:[#allocation11 + $0xd4] ss:$8 sps:$4 sm:$0xff]  }
  0x67   :  { %v1978_v1 = vcombine.high %v112_v55, %v116_v56  ;;  %v1977_v4 = vcombine.low %v112_v55, %v116_v56  ;;  %v2182_v23 = vld [vmem:[#allocation11 + $0x130] ss:$8 sps:$4 sm:$0xff]   ;;  %v2188_v27 = vld [vmem:[#allocation11 + $0x120] ss:$8 sps:$4 sm:$0xff]   ;;  %v2235_v56 = vld [vmem:[#allocation11 + $0xa4] ss:$8 sps:$4 sm:$0xff]  }
  0x68   :  { %v2191_v30 = vld [vmem:[#allocation11 + $0x10] ss:$8 sps:$4 sm:$0xff]   ;;  %v2197_v34 = vld [vmem:[#allocation11] ss:$8 sps:$4 sm:$0xff]  }
  0x69   :  { %444 = vmatpush1.bf16.msra.mxu0 %v1948_v60  ;;  %487 = vmatpush1.bf16.msra.mxu1 %v1950_v61  ;;  %v117_v60 = vld [vmem:[#allocation7 + $0x38] sm:$0xff]  ;;  %v1988_v61 = vcombine.high %v121_v51, %v125_v52  ;;  %v2200_v35 = vld [vmem:[#allocation11 + $0x100] ss:$8 sps:$4 sm:$0xff]  }
  0x6a   :  { %445 = vmatprep.subr.bf16.mxu0 %v1941_v62  ;;  %488 = vmatprep.subr.bf16.mxu1 %v1943_v2  ;;  %v1985_v62 = vcombine.low %v120_v47, %v124_v48  ;;  %v1980_v2 = vcombine.high %v113_v59, %v117_v60  ;;  %v2194_v31 = vld [vmem:[#allocation11 + $0x110] ss:$8 sps:$4 sm:$0xff]   ;;  %v2212_v43 = vld [vmem:[#allocation11 + $0x1e0] ss:$8 sps:$4 sm:$0xff]   ;;  %v2223_v48 = vld [vmem:[#allocation11 + $0xc4] ss:$8 sps:$4 sm:$0xff]  }
  0x6b   :  { %v2203_v38 = vld [vmem:[#allocation11 + $0xf0] ss:$8 sps:$4 sm:$0xff]   ;;  %v2224_v51 = vld [vmem:[#allocation11 + $0x1c0] ss:$8 sps:$4 sm:$0xff]   ;;  %v2229_v52 = vld [vmem:[#allocation11 + $0xb4] ss:$8 sps:$4 sm:$0xff]  }
  0x6c   :  { %v2206_v39 = vld [vmem:[#allocation11 + $0x1f0] ss:$8 sps:$4 sm:$0xff]  }
  0x6d   :  { %446 = vmatpush1.bf16.msra.mxu0 %v1940_v5  ;;  %489 = vmatpush1.bf16.msra.mxu1 %v1942_v6  ;;  %v2160_v5 = vld [vmem:[#allocation11 + $0x174] ss:$8 sps:$4 sm:$0xff]   ;;  %v1979_v6 = vcombine.low %v113_v59, %v117_v60  ;;  %v2218_v47 = vld [vmem:[#allocation11 + $0x1d0] ss:$8 sps:$4 sm:$0xff]   ;;  %v2236_v59 = vld [vmem:[#allocation11 + $0x1a0] ss:$8 sps:$4 sm:$0xff]  }
  0x6e   :  { %693 = vmatprep.subr.bf16.mxu0 %v1998_v7  ;;  %736 = vmatprep.subr.bf16.mxu1 %v2000_v10  ;;  %v2155_v7 = vld [vmem:[#allocation11 + $0x70] ss:$8 sps:$4 sm:$0xff]   ;;  %v2161_v10 = vld [vmem:[#allocation11 + $0x60] ss:$8 sps:$4 sm:$0xff]   ;;  %v2241_v60 = vld [vmem:[#allocation11 + $0x94] ss:$8 sps:$4 sm:$0xff]  }
  0x6f   :  { %v2230_v55 = vld [vmem:[#allocation11 + $0x1b0] ss:$8 sps:$4 sm:$0xff]  }
  0x70   :  { %1970 = vmatmul.mubr.msk.bf16.vlgmr.msra.gmra.mxu0 %vm341_vm0, %v2589_v41  ;;  %1971 = vmatmul.mubr.msk.bf16.vlgmr.msra.gmra.mxu1 %vm341_vm0, %v2589_v41  ;;  %v2154_v41 = vld [vmem:[#allocation2] sm:$0xff]  }
  0x71   :  { %694 = vmatpush1.bf16.msra.mxu0 %v1997_v13  ;;  %737 = vmatpush1.bf16.msra.mxu1 %v1999_v14  ;;  %v2172_v13 = vld [vmem:[#allocation11 + $0x154] ss:$8 sps:$4 sm:$0xff]   ;;  %v2167_v14 = vld [vmem:[#allocation11 + $0x50] ss:$8 sps:$4 sm:$0xff]  }
  0x72   :  { %695 = vmatprep.subr.bf16.mxu0 %v1990_v15  ;;  %738 = vmatprep.subr.bf16.mxu1 %v1992_v18  ;;  %v2170_v15 = vld [vmem:[#allocation11 + $0x150] ss:$8 sps:$4 sm:$0xff]   ;;  %v2173_v18 = vld [vmem:[#allocation11 + $0x40] ss:$8 sps:$4 sm:$0xff]  }
  0x73   :  { %717 = vmatprep.mubr.bf16.mxu0 %v2525_v0  ;;  %760 = vmatprep.mubr.bf16.mxu1 %v2525_v0 }
  0x75   :  { %696 = vmatpush1.bf16.msra.mxu0 %v1989_v21  ;;  %739 = vmatpush1.bf16.msra.mxu1 %v1991_v24  ;;  %v2184_v21 = vld [vmem:[#allocation11 + $0x134] ss:$8 sps:$4 sm:$0xff]   ;;  %v2187_v24 = vld [vmem:[#allocation11 + $0x24] ss:$8 sps:$4 sm:$0xff]  }
  0x76   :  { %697 = vmatprep.subr.bf16.mxu0 %v1982_v25  ;;  %740 = vmatprep.subr.bf16.mxu1 %v1984_v28  ;;  %v2190_v25 = vld [vmem:[#allocation11 + $0x124] ss:$8 sps:$4 sm:$0xff]   ;;  %v2193_v28 = vld [vmem:[#allocation11 + $0x14] ss:$8 sps:$4 sm:$0xff]  }
  0x79   :  { %698 = vmatpush1.bf16.msra.mxu0 %v1981_v29  ;;  %741 = vmatpush1.bf16.msra.mxu1 %v1983_v32  ;;  %v2196_v29 = vld [vmem:[#allocation11 + $0x114] ss:$8 sps:$4 sm:$0xff]   ;;  %v2199_v32 = vld [vmem:[#allocation11 + $0x4] ss:$8 sps:$4 sm:$0xff]  }
  0x7a   :  { %699 = vmatprep.subr.bf16.mxu0 %v1974_v33  ;;  %742 = vmatprep.subr.bf16.mxu1 %v1976_v36  ;;  %v2202_v33 = vld [vmem:[#allocation11 + $0x104] ss:$8 sps:$4 sm:$0xff]   ;;  %v2205_v36 = vld [vmem:[#allocation11 + $0xf4] ss:$8 sps:$4 sm:$0xff]  }
  0x7d   :  { %700 = vmatpush1.bf16.msra.mxu0 %v1973_v37  ;;  %743 = vmatpush1.bf16.msra.mxu1 %v1975_v40  ;;  %v2208_v37 = vld [vmem:[#allocation11 + $0x1f4] ss:$8 sps:$4 sm:$0xff]   ;;  %v2211_v40 = vld [vmem:[#allocation11 + $0xe4] ss:$8 sps:$4 sm:$0xff]  }
  0x7e   :  { %779 = vmatprep.subr.bf16.mxu0 %v2002_v42  ;;  %822 = vmatprep.subr.bf16.mxu1 %v2004_v45  ;;  %v2209_v42 = vld [vmem:[#allocation11 + $0xe0] ss:$8 sps:$4 sm:$0xff]   ;;  %v2220_v45 = vld [vmem:[#allocation11 + $0x1d4] ss:$8 sps:$4 sm:$0xff]  }
  0x80   :  { %2005 = vmatmul.mubr.msk.bf16.vlgmr.msra.gmra.mxu0 %vm341_vm0, %v2154_v41  ;;  %2006 = vmatmul.mubr.msk.bf16.vlgmr.msra.gmra.mxu1 %vm341_vm0, %v2154_v41 }
  0x81   :  { %780 = vmatpush1.bf16.msra.mxu0 %v2001_v46  ;;  %823 = vmatpush1.bf16.msra.mxu1 %v2003_v49  ;;  %v2215_v46 = vld [vmem:[#allocation11 + $0xd0] ss:$8 sps:$4 sm:$0xff]   ;;  %v2226_v49 = vld [vmem:[#allocation11 + $0x1c4] ss:$8 sps:$4 sm:$0xff]  }
  0x82   :  { %781 = vmatprep.subr.bf16.mxu0 %v1994_v50  ;;  %824 = vmatprep.subr.bf16.mxu1 %v1996_v53  ;;  %v2221_v50 = vld [vmem:[#allocation11 + $0xc0] ss:$8 sps:$4 sm:$0xff]   ;;  %v2232_v53 = vld [vmem:[#allocation11 + $0x1b4] ss:$8 sps:$4 sm:$0xff]  }
  0x83   :  { %803 = vmatprep.mubr.bf16.mxu0 %v2525_v0  ;;  %846 = vmatprep.mubr.bf16.mxu1 %v2525_v0  ;;  %v2166_v0 = vld [vmem:[#allocation11 + $0x164] ss:$8 sps:$4 sm:$0xff]  }
  0x85   :  { %782 = vmatpush1.bf16.msra.mxu0 %v1993_v54  ;;  %825 = vmatpush1.bf16.msra.mxu1 %v1995_v57  ;;  %v2227_v54 = vld [vmem:[#allocation11 + $0xb0] ss:$8 sps:$4 sm:$0xff]   ;;  %v2238_v57 = vld [vmem:[#allocation11 + $0x1a4] ss:$8 sps:$4 sm:$0xff]  }
  0x86   :  { %783 = vmatprep.subr.bf16.mxu0 %v1986_v58  ;;  %826 = vmatprep.subr.bf16.mxu1 %v1988_v61  ;;  %v2233_v58 = vld [vmem:[#allocation11 + $0xa0] ss:$8 sps:$4 sm:$0xff]   ;;  %v2244_v61 = vld [vmem:[#allocation11 + $0x194] ss:$8 sps:$4 sm:$0xff]  }
  0x89   :  { %784 = vmatpush1.bf16.msra.mxu0 %v1985_v62  ;;  %827 = vmatpush1.bf16.msra.mxu1 %v1987_v63  ;;  %v2239_v62 = vld [vmem:[#allocation11 + $0x90] ss:$8 sps:$4 sm:$0xff]  }
  0x8a   :  { %785 = vmatprep.subr.bf16.mxu0 %v1978_v1  ;;  %828 = vmatprep.subr.bf16.mxu1 %v1980_v2  ;;  %v2242_v63 = vld [vmem:[#allocation11 + $0x190] ss:$8 sps:$4 sm:$0xff]   ;;  %v859_v1 = vlaneseq  ;;  %v2247_v2 = vld [vmem:[#allocation11 + $0x84] ss:$8 sps:$4 sm:$0xff]  }
  0x8d   :  { %786 = vmatpush1.bf16.msra.mxu0 %v1977_v4  ;;  %829 = vmatpush1.bf16.msra.mxu1 %v1979_v6  ;;  %v2245_v4 = vld [vmem:[#allocation11 + $0x80] ss:$8 sps:$4 sm:$0xff]   ;;  %v2609_v6 = vshrl.u32 %v859_v1, 7 }
  0x8e   :  { %1719 = vmatprep.subr.bf16.mxu0 %v2157_v3  ;;  %1762 = vmatprep.subr.bf16.mxu1 %v2160_v5  ;;  %v2250_v3 = vld [vmem:[#allocation11 + $0x184] ss:$8 sps:$4 sm:$0xff]   ;;  %v2248_v5 = vld [vmem:[#allocation11 + $0x180] ss:$8 sps:$4 sm:$0xff]  }
  0x90   :  { %2007 = vmatmul.mubr.msk.bf16.vlgmr.msra.gmra.mxu0 %vm341_vm0, %v2154_v41  ;;  %2008 = vmatmul.mubr.msk.bf16.vlgmr.msra.gmra.mxu1 %vm341_vm0, %v2154_v41  ;;  %v2214_v41 = vld [vmem:[#allocation11 + $0x1e4] ss:$8 sps:$4 sm:$0xff]  }
  0x91   :  { %1720 = vmatpush1.bf16.msra.mxu0 %v2155_v7  ;;  %1763 = vmatpush1.bf16.msra.mxu1 %v2158_v8  ;;  %v2253_v7 = vld [vmem:[#allocation11 + $0x274] ss:$8 sps:$4 sm:$0xff]  }
  0x92   :  { %1721 = vmatprep.subr.bf16.mxu0 %v2163_v9  ;;  %1764 = vmatprep.subr.bf16.mxu1 %v2166_v0  ;;  %v2256_v8 = vld [vmem:[#allocation11 + $0x374] ss:$8 sps:$4 sm:$0xff]   ;;  %v877_v9 = vsub.s32 4, %v2609_v6  ;;  %v885_v0 = vsub.s32 6, %v2609_v6 }
  0x95   :  { %1722 = vmatpush1.bf16.msra.mxu0 %v2161_v10  ;;  %1765 = vmatpush1.bf16.msra.mxu1 %v2164_v11  ;;  %v2613_v10 = vld [vmem:[#allocation10] sm:$0xff] }
  0x96   :  { %1723 = vmatprep.subr.bf16.mxu0 %v2169_v12  ;;  %1766 = vmatprep.subr.bf16.mxu1 %v2172_v13  ;;  %v2616_v11 = vrot.slane %v2613_v10, %v877_v9  ;;  %v2619_v12 = vrot.slane %v2613_v10, %v885_v0 }
  0x99   :  { %1724 = vmatpush1.bf16.msra.mxu0 %v2167_v14  ;;  %1767 = vmatpush1.bf16.msra.mxu1 %v2170_v15 }
  0x9a   :  { %1725 = vmatprep.subr.bf16.mxu0 %v2175_v16  ;;  %1768 = vmatprep.subr.bf16.mxu1 %v2178_v17 }
  0x9d   :  { %1726 = vmatpush1.bf16.msra.mxu0 %v2173_v18  ;;  %1769 = vmatpush1.bf16.msra.mxu1 %v2176_v19 }
  0x9e   :  { %1727 = vmatprep.subr.bf16.mxu0 %v2181_v20  ;;  %1770 = vmatprep.subr.bf16.mxu1 %v2184_v21 }
  0xa1   :  { %1728 = vmatpush1.bf16.msra.mxu0 %v2179_v22  ;;  %1771 = vmatpush1.bf16.msra.mxu1 %v2182_v23 }
  0xa2   :  { %1729 = vmatprep.subr.bf16.mxu0 %v2187_v24  ;;  %1772 = vmatprep.subr.bf16.mxu1 %v2190_v25 }
  0xa5   :  { %1730 = vmatpush1.bf16.msra.mxu0 %v2185_v26  ;;  %1773 = vmatpush1.bf16.msra.mxu1 %v2188_v27 }
  0xa6   :  { %1731 = vmatprep.subr.bf16.mxu0 %v2193_v28  ;;  %1774 = vmatprep.subr.bf16.mxu1 %v2196_v29  ;;  %v865_v29 = vsub.s32 1, %v2609_v6 }
  0xa9   :  { %1732 = vmatpush1.bf16.msra.mxu0 %v2191_v30  ;;  %1775 = vmatpush1.bf16.msra.mxu1 %v2194_v31  ;;  %v861_v31 = vsub.s32 0, %v2609_v6 }
  0xaa   :  { %1733 = vmatprep.subr.bf16.mxu0 %v2199_v32  ;;  %1776 = vmatprep.subr.bf16.mxu1 %v2202_v33  ;;  %v873_v32 = vsub.s32 3, %v2609_v6 }
  0xad   :  { %1734 = vmatpush1.bf16.msra.mxu0 %v2197_v34  ;;  %1777 = vmatpush1.bf16.msra.mxu1 %v2200_v35  ;;  %v869_v34 = vsub.s32 2, %v2609_v6 }
  0xae   :  { %1735 = vmatprep.subr.bf16.mxu0 %v2205_v36  ;;  %1778 = vmatprep.subr.bf16.mxu1 %v2208_v37  ;;  %v866_v37 = vrot.slane %v2613_v10, %v865_v29 }
  0xb1   :  { %1736 = vmatpush2.bf16.msra.mxu0 %v2203_v38  ;;  %1779 = vmatpush2.bf16.msra.mxu1 %v2206_v39 }
  0xb2   :  { %1737 = vmatprep.subr.bf16.mxu0 %v2211_v40  ;;  %1780 = vmatprep.subr.bf16.mxu1 %v2214_v41  ;;  %v862_v40 = vrot.slane %v2613_v10, %v861_v31 }
  0xb5   :  { %1738 = vmatpush2.bf16.msra.mxu0 %v2209_v42  ;;  %1781 = vmatpush2.bf16.msra.mxu1 %v2212_v43  ;;  %v874_v42 = vrot.slane %v2613_v10, %v873_v32  ;;  %v2257_v32 = vld [vmem:[#allocation11 + $0x260] ss:$8 sps:$4 sm:$0xff]  }
  0xb6   :  { %1739 = vmatprep.subr.bf16.mxu0 %v2217_v44  ;;  %1782 = vmatprep.subr.bf16.mxu1 %v2220_v45  ;;  %v870_v45 = vrot.slane %v2613_v10, %v869_v34 }
  0xb9   :  { %1740 = vmatpush2.bf16.msra.mxu0 %v2215_v46  ;;  %1783 = vmatpush2.bf16.msra.mxu1 %v2218_v47 }
  0xba   :  { %1741 = vmatprep.subr.bf16.mxu0 %v2223_v48  ;;  %1784 = vmatprep.subr.bf16.mxu1 %v2226_v49 }
  0xbd   :  { %1742 = vmatpush2.bf16.msra.mxu0 %v2221_v50  ;;  %1785 = vmatpush2.bf16.msra.mxu1 %v2224_v51 }
  0xbe   :  { %1743 = vmatprep.subr.bf16.mxu0 %v2229_v52  ;;  %1786 = vmatprep.subr.bf16.mxu1 %v2232_v53 }
  0xc1   :  { %1744 = vmatpush2.bf16.msra.mxu0 %v2227_v54  ;;  %1787 = vmatpush2.bf16.msra.mxu1 %v2230_v55 }
  0xc2   :  { %1745 = vmatprep.subr.bf16.mxu0 %v2235_v56  ;;  %1788 = vmatprep.subr.bf16.mxu1 %v2238_v57 }
  0xc5   :  { %1746 = vmatpush2.bf16.msra.mxu0 %v2233_v58  ;;  %1789 = vmatpush2.bf16.msra.mxu1 %v2236_v59 }
  0xc6   :  { %1747 = vmatprep.subr.bf16.mxu0 %v2241_v60  ;;  %1790 = vmatprep.subr.bf16.mxu1 %v2244_v61 }
  0xc9   :  { %1748 = vmatpush2.bf16.msra.mxu0 %v2239_v62  ;;  %1791 = vmatpush2.bf16.msra.mxu1 %v2242_v63 }
  0xca   :  { %1749 = vmatprep.subr.bf16.mxu0 %v2247_v2  ;;  %1792 = vmatprep.subr.bf16.mxu1 %v2250_v3 }
  0xcd   :  { %1750 = vmatpush2.bf16.msra.mxu0 %v2245_v4  ;;  %1793 = vmatpush2.bf16.msra.mxu1 %v2248_v5 }
  0xce   :  { %1805 = vmatprep.subr.bf16.mxu0 %v2253_v7  ;;  %1848 = vmatprep.subr.bf16.mxu1 %v2256_v8  ;;  %v2251_v8 = vld [vmem:[#allocation11 + $0x270] ss:$8 sps:$4 sm:$0xff]  }
 0x120   :  { %v379_v13 = vpop.f32.mrf.mxu0  ;;  %v422_v14 = vpop.f32.mrf.mxu1 }
 0x122   :  { %v381_v15 = vpop.f32.mrf.mxu0  ;;  %v424_v16 = vpop.f32.mrf.mxu1 }
 0x124   :  { %v383_v17 = vpop.f32.mrf.mxu0  ;;  %v426_v18 = vpop.f32.mrf.mxu1 }
 0x126   :  { %v385_v19 = vpop.f32.mrf.mxu0  ;;  %v428_v20 = vpop.f32.mrf.mxu1 }
 0x130   :  { %v465_v21 = vpop.f32.mrf.mxu0  ;;  %v2621_v22 = vpop.f32.mrf.mxu1 }
 0x132   :  { %v2623_v23 = vpop.f32.mrf.mxu0  ;;  %v2625_v24 = vpop.f32.mrf.mxu1 }
 0x134   :  { %v2627_v25 = vpop.f32.mrf.mxu0  ;;  %v2629_v26 = vpop.f32.mrf.mxu1 }
 0x136   :  { %v2631_v27 = vpop.f32.mrf.mxu0  ;;  %v2633_v28 = vpop.f32.mrf.mxu1 }
 0x140   :  { %v719_v30 = vpop.f32.mrf.mxu0  ;;  %v762_v33 = vpop.f32.mrf.mxu1 }
 0x141   :  { %v720_v39 = vadd.f32 %v719_v30, %v379_v13  ;;  %v763_v44 = vadd.f32 %v762_v33, %v422_v14  ;;  %v2254_v13 = vld [vmem:[#allocation11 + $0x370] ss:$8 sps:$4 sm:$0xff]   ;;  %v2259_v14 = vld [vmem:[#allocation11 + $0x264] ss:$8 sps:$4 sm:$0xff]  }
 0x142   :  { %v721_v35 = vpop.f32.mrf.mxu0  ;;  %v764_v38 = vpop.f32.mrf.mxu1 }
 0x143   :  { %v722_v36 = vadd.f32 %v721_v35, %v381_v15  ;;  %v765_v41 = vadd.f32 %v764_v38, %v424_v16  ;;  %v899_v54 = vadd.f32 %v862_v40, %v720_v39  ;;  %v901_v58 = vadd.f32 %v870_v45, %v763_v44  ;;  %v2260_v35 = vld [vmem:[#allocation11 + $0x360] ss:$8 sps:$4 sm:$0xff]  }
 0x144   :  { %v723_v43 = vpop.f32.mrf.mxu0  ;;  %v766_v47 = vpop.f32.mrf.mxu1  ;;  %v881_v16 = vsub.s32 5, %v2609_v6 }
 0x145   :  { %v724_v46 = vadd.f32 %v723_v43, %v383_v17  ;;  %v767_v48 = vadd.f32 %v766_v47, %v426_v18  ;;  %v900_v50 = vadd.f32 %v866_v37, %v722_v36  ;;  %v902_v55 = vadd.f32 %v874_v42, %v765_v41  ;;  %v2262_v17 = vld [vmem:[#allocation11 + $0x364] ss:$8 sps:$4 sm:$0xff]   ;;  %v2265_v36 = vld [vmem:[#allocation11 + $0x254] ss:$8 sps:$4 sm:$0xff]  }
 0x146   :  { %v725_v49 = vpop.f32.mrf.mxu0  ;;  %v768_v53 = vpop.f32.mrf.mxu1  ;;  %v915_v2 = vmax.f32 %v899_v54, 0.0  ;;  %v917_v5 = vmax.f32 %v901_v58, 0.0  ;;  %v882_v39 = vrot.slane %v2613_v10, %v881_v16  ;;  %v2287_v16 = vld [vmem:[#allocation11 + $0x210] ss:$8 sps:$4 sm:$0xff]  }
 0x147   :  { %v907_v51 = vadd.f32 %v862_v40, %v724_v46  ;;  %v726_v52 = vadd.f32 %v725_v49, %v385_v19  ;;  %v909_v56 = vadd.f32 %v870_v45, %v767_v48  ;;  %v769_v57 = vadd.f32 %v768_v53, %v428_v20  ;;  %v2263_v46 = vld [vmem:[#allocation11 + $0x250] ss:$8 sps:$4 sm:$0xff]   ;;  %v2271_v49 = vld [vmem:[#allocation11 + $0x244] ss:$8 sps:$4 sm:$0xff]  }
 0x148   :  { %v916_v62 = vmax.f32 %v900_v50, 0.0  ;;  %v918_v3 = vmax.f32 %v902_v55, 0.0  ;;  %v889_v19 = vsub.s32 7, %v2609_v6  ;;  %v2266_v48 = vld [vmem:[#allocation11 + $0x350] ss:$8 sps:$4 sm:$0xff]  }
 0x149   :  { %v908_v59 = vadd.f32 %v866_v37, %v726_v52  ;;  %v923_v60 = vmax.f32 %v907_v51, 0.0  ;;  %v910_v61 = vadd.f32 %v874_v42, %v769_v57  ;;  %v925_v63 = vmax.f32 %v909_v56, 0.0  ;;  %v2269_v57 = vld [vmem:[#allocation11 + $0x240] ss:$8 sps:$4 sm:$0xff]  }
 0x14b   :  { %v924_v1 = vmax.f32 %v908_v59, 0.0  ;;  %v926_v4 = vmax.f32 %v910_v61, 0.0  ;;  %v931_v9 = vpack.c.bf16 %v923_v60, %v915_v2  ;;  %v933_v15 = vpack.c.bf16 %v925_v63, %v917_v5  ;;  %v2278_v5 = vld [vmem:[#allocation11 + $0x330] ss:$8 sps:$4 sm:$0xff]  }
 0x14d   :  { %v932_v7 = vpack.c.bf16 %v924_v1, %v916_v62  ;;  %v934_v0 = vpack.c.bf16 %v926_v4, %v918_v3  ;;  %v2275_v3 = vld [vmem:[#allocation11 + $0x230] ss:$8 sps:$4 sm:$0xff]  }
 0x14f   :  { %1751 = vmatprep.mubr.bf16.mxu0 %v932_v7  ;;  %1794 = vmatprep.mubr.bf16.mxu1 %v934_v0  ;;  %v2281_v0 = vld [vmem:[#allocation11 + $0x220] ss:$8 sps:$4 sm:$0xff]  }
 0x150   :  { %v805_v18 = vpop.f32.mrf.mxu0  ;;  %1752 = vmatmul.mubr.bf16.vlgmr.msra.gmra.mxu0 %v931_v9  ;;  %v848_v30 = vpop.f32.mrf.mxu1  ;;  %1795 = vmatmul.mubr.bf16.vlgmr.msra.gmra.mxu1 %v933_v15  ;;  %v2286_v9 = vld [vmem:[#allocation11 + $0x324] ss:$8 sps:$4 sm:$0xff]   ;;  %v2292_v15 = vld [vmem:[#allocation11 + $0x314] ss:$8 sps:$4 sm:$0xff]  }
 0x151   :  { %v806_v20 = vadd.f32 %v805_v18, %v465_v21  ;;  %1806 = vmatpush1.bf16.msra.mxu0 %v2251_v8  ;;  %v849_v33 = vadd.f32 %v848_v30, %v2621_v22  ;;  %1849 = vmatpush1.bf16.msra.mxu1 %v2254_v13  ;;  %v2268_v21 = vld [vmem:[#allocation11 + $0x354] ss:$8 sps:$4 sm:$0xff]   ;;  %v890_v22 = vrot.slane %v2613_v10, %v889_v19  ;;  %v2274_v10 = vld [vmem:[#allocation11 + $0x344] ss:$8 sps:$4 sm:$0xff]   ;;  %v2284_v13 = vld [vmem:[#allocation11 + $0x320] ss:$8 sps:$4 sm:$0xff]  }
 0x152   :  { %v807_v34 = vpop.f32.mrf.mxu0  ;;  %1807 = vmatprep.subr.bf16.mxu0 %v2259_v14  ;;  %v850_v40 = vpop.f32.mrf.mxu1  ;;  %1850 = vmatprep.subr.bf16.mxu1 %v2262_v17  ;;  %v2283_v8 = vld [vmem:[#allocation11 + $0x224] ss:$8 sps:$4 sm:$0xff]   ;;  %v2289_v14 = vld [vmem:[#allocation11 + $0x214] ss:$8 sps:$4 sm:$0xff]   ;;  %v2290_v17 = vld [vmem:[#allocation11 + $0x310] ss:$8 sps:$4 sm:$0xff]  }
 0x153   :  { %v903_v37 = vadd.f32 %v2616_v11, %v806_v20  ;;  %v808_v38 = vadd.f32 %v807_v34, %v2623_v23  ;;  %v905_v41 = vadd.f32 %v2619_v12, %v849_v33  ;;  %v851_v42 = vadd.f32 %v850_v40, %v2625_v24  ;;  %v2295_v18 = vld [vmem:[#allocation11 + $0x204] ss:$8 sps:$4 sm:$0xff]   ;;  %v2293_v20 = vld [vmem:[#allocation11 + $0x200] ss:$8 sps:$4 sm:$0xff]   ;;  %v2304_v33 = vld [vmem:[#allocation11 + $0x3f4] ss:$8 sps:$4 sm:$0xff]  }
 0x154   :  { %v809_v43 = vpop.f32.mrf.mxu0  ;;  %v852_v45 = vpop.f32.mrf.mxu1  ;;  %v2298_v19 = vld [vmem:[#allocation11 + $0x304] ss:$8 sps:$4 sm:$0xff]   ;;  %v2296_v30 = vld [vmem:[#allocation11 + $0x300] ss:$8 sps:$4 sm:$0xff]   ;;  %v2299_v34 = vld [vmem:[#allocation11 + $0x2f0] ss:$8 sps:$4 sm:$0xff]  }
 0x155   :  { %v810_v44 = vadd.f32 %v809_v43, %v2627_v25  ;;  %1808 = vmatpush1.bf16.msra.mxu0 %v2257_v32  ;;  %v853_v47 = vadd.f32 %v852_v45, %v2629_v26  ;;  %1851 = vmatpush1.bf16.msra.mxu1 %v2260_v35  ;;  %v904_v50 = vadd.f32 %v882_v39, %v808_v38  ;;  %v919_v55 = vmax.f32 %v903_v37, 0.0  ;;  %v2301_v32 = vld [vmem:[#allocation11 + $0x2f4] ss:$8 sps:$4 sm:$0xff]   ;;  %v2302_v35 = vld [vmem:[#allocation11 + $0x3f0] ss:$8 sps:$4 sm:$0xff]  }
 0x156   :  { %v811_v23 = vpop.f32.mrf.mxu0  ;;  %1809 = vmatprep.subr.bf16.mxu0 %v2265_v36  ;;  %v854_v52 = vpop.f32.mrf.mxu1  ;;  %1852 = vmatprep.subr.bf16.mxu1 %v2268_v21  ;;  %v906_v53 = vadd.f32 %v890_v22, %v851_v42  ;;  %v921_v58 = vmax.f32 %v905_v41, 0.0  ;;  %v2307_v36 = vld [vmem:[#allocation11 + $0x2e4] ss:$8 sps:$4 sm:$0xff]   ;;  %v2305_v38 = vld [vmem:[#allocation11 + $0x2e0] ss:$8 sps:$4 sm:$0xff]  }
 0x157   :  { %v911_v51 = vadd.f32 %v2616_v11, %v810_v44  ;;  %v812_v24 = vadd.f32 %v811_v23, %v2631_v27  ;;  %v913_v25 = vadd.f32 %v2619_v12, %v853_v47  ;;  %v855_v54 = vadd.f32 %v854_v52, %v2633_v28  ;;  %v2272_v11 = vld [vmem:[#allocation11 + $0x340] ss:$8 sps:$4 sm:$0xff]   ;;  %v2277_v27 = vld [vmem:[#allocation11 + $0x234] ss:$8 sps:$4 sm:$0xff]   ;;  %v2310_v37 = vld [vmem:[#allocation11 + $0x3e4] ss:$8 sps:$4 sm:$0xff]  }
 0x158   :  { %v920_v61 = vmax.f32 %v904_v50, 0.0  ;;  %v2280_v12 = vld [vmem:[#allocation11 + $0x334] ss:$8 sps:$4 sm:$0xff]   ;;  %v922_v1 = vmax.f32 %v906_v53, 0.0  ;;  %v2311_v41 = vld [vmem:[#allocation11 + $0x2d0] ss:$8 sps:$4 sm:$0xff]  }
 0x159   :  { %v927_v26 = vmax.f32 %v911_v51, 0.0  ;;  %v912_v56 = vadd.f32 %v882_v39, %v812_v24  ;;  %1810 = vmatpush1.bf16.msra.mxu0 %v2263_v46  ;;  %v929_v59 = vmax.f32 %v913_v25, 0.0  ;;  %v914_v60 = vadd.f32 %v890_v22, %v855_v54  ;;  %1853 = vmatpush1.bf16.msra.mxu1 %v2266_v48  ;;  %v2308_v39 = vld [vmem:[#allocation11 + $0x3e0] ss:$8 sps:$4 sm:$0xff]   ;;  %v2313_v40 = vld [vmem:[#allocation11 + $0x2d4] ss:$8 sps:$4 sm:$0xff]  }
 0x15a   :  { %1811 = vmatprep.subr.bf16.mxu0 %v2271_v49  ;;  %1854 = vmatprep.subr.bf16.mxu1 %v2274_v10  ;;  %v2316_v21 = vld [vmem:[#allocation11 + $0x3d4] ss:$8 sps:$4 sm:$0xff]   ;;  %v2314_v42 = vld [vmem:[#allocation11 + $0x3d0] ss:$8 sps:$4 sm:$0xff]   ;;  %v2319_v22 = vld [vmem:[#allocation11 + $0x2c4] ss:$8 sps:$4 sm:$0xff]  }
 0x15b   :  { %v2662_v62 = vpack.c.bf16 %v927_v26, %v919_v55  ;;  %v928_v63 = vmax.f32 %v912_v56, 0.0  ;;  %v2664_v28 = vpack.c.bf16 %v929_v59, %v921_v58  ;;  %v930_v2 = vmax.f32 %v914_v60, 0.0  ;;  %v2322_v43 = vld [vmem:[#allocation11 + $0x3c4] ss:$8 sps:$4 sm:$0xff]   ;;  %v2317_v44 = vld [vmem:[#allocation11 + $0x2c0] ss:$8 sps:$4 sm:$0xff]  }
 0x15c   :  { %v2320_v45 = vld [vmem:[#allocation11 + $0x3c0] ss:$8 sps:$4 sm:$0xff]   ;;  %v2325_v46 = vld [vmem:[#allocation11 + $0x2b4] ss:$8 sps:$4 sm:$0xff]   ;;  %v2323_v23 = vld [vmem:[#allocation11 + $0x2b0] ss:$8 sps:$4 sm:$0xff]  }
 0x15d   :  { %1812 = vmatpush1.bf16.msra.mxu0 %v2269_v57  ;;  %v936_v4 = vpack.c.bf16 %v928_v63, %v920_v61  ;;  %1855 = vmatpush1.bf16.msra.mxu1 %v2272_v11  ;;  %v938_v7 = vpack.c.bf16 %v930_v2, %v922_v1  ;;  %v2328_v47 = vld [vmem:[#allocation11 + $0x3b4] ss:$8 sps:$4 sm:$0xff]   ;;  %v2326_v48 = vld [vmem:[#allocation11 + $0x3b0] ss:$8 sps:$4 sm:$0xff]   ;;  %v2331_v49 = vld [vmem:[#allocation11 + $0x2a4] ss:$8 sps:$4 sm:$0xff]  }
 0x15e   :  { %1813 = vmatprep.subr.bf16.mxu0 %v2277_v27  ;;  %1856 = vmatprep.subr.bf16.mxu1 %v2280_v12  ;;  %v2334_v50 = vld [vmem:[#allocation11 + $0x3a4] ss:$8 sps:$4 sm:$0xff]   ;;  %v2329_v51 = vld [vmem:[#allocation11 + $0x2a0] ss:$8 sps:$4 sm:$0xff]   ;;  %v2337_v52 = vld [vmem:[#allocation11 + $0x294] ss:$8 sps:$4 sm:$0xff]  }
 0x15f   :  { %1837 = vmatprep.mubr.bf16.mxu0 %v936_v4  ;;  %1880 = vmatprep.mubr.bf16.mxu1 %v938_v7  ;;  %v2332_v24 = vld [vmem:[#allocation11 + $0x3a0] ss:$8 sps:$4 sm:$0xff]   ;;  %v2340_v10 = vld [vmem:[#allocation11 + $0x394] ss:$8 sps:$4 sm:$0xff]   ;;  %v2335_v53 = vld [vmem:[#allocation11 + $0x290] ss:$8 sps:$4 sm:$0xff]  }
 0x160   :  { %v2338_v25 = vld [vmem:[#allocation11 + $0x390] ss:$8 sps:$4 sm:$0xff]   ;;  %v2343_v54 = vld [vmem:[#allocation11 + $0x284] ss:$8 sps:$4 sm:$0xff]   ;;  %v2341_v26 = vld [vmem:[#allocation11 + $0x280] ss:$8 sps:$4 sm:$0xff]  }
 0x161   :  { %1814 = vmatpush1.bf16.msra.mxu0 %v2275_v3  ;;  %1857 = vmatpush1.bf16.msra.mxu1 %v2278_v5  ;;  %v2346_v55 = vld [vmem:[#allocation11 + $0x384] ss:$8 sps:$4 sm:$0xff]   ;;  %v2344_v56 = vld [vmem:[#allocation11 + $0x380] ss:$8 sps:$4 sm:$0xff]  }
 0x162   :  { %1815 = vmatprep.subr.bf16.mxu0 %v2283_v8  ;;  %1858 = vmatprep.subr.bf16.mxu1 %v2286_v9  ;;  %v1067_v59 = vld [vmem:[%s2684_s6] sm:$0x3]  ;;  %s2526_s6 = smov [#allocation13]  }
 0x163   :  { %v1072_v11 = vrot.slane %v1067_v59, %v861_v31  ;;  %v1076_v61 = vrot.slane %v1067_v59, %v865_v29  ;;  %s1920_s10 = sshll.u32 %s2526_s6, 4  ;;  %s1921_s10 = int_to_ptr.vmem [resolvable:$true] %s1920_s10 }
 0x164   :  { %s2483_s11 = scalar_lea.vmem %s1921_s10, 512  ;;  %p2488_p3 = scmp.lt.s32.totalorder %s1921_s10, %s1921_s10 }
 0x165   :  { %1816 = vmatpush1.bf16.msra.mxu0 %v2281_v0  ;;  %1859 = vmatpush1.bf16.msra.mxu1 %v2284_v13  ;;  %p2484_p2 = scmp.ne.s32.totalorder %s1921_s10, %s2483_s11  ;;  %p2489_p4 = scmp.lt.s32.totalorder %s2483_s11, %s2483_s11 }
 0x166   :  { %1817 = vmatprep.subr.bf16.mxu0 %v2289_v14  ;;  %1860 = vmatprep.subr.bf16.mxu1 %v2292_v15 }
 0x167   :  { %p2490_p5 = por %p2489_p4, %p2488_p3 }
 0x169   :  { %1818 = vmatpush1.bf16.msra.mxu0 %v2287_v16  ;;  %1861 = vmatpush1.bf16.msra.mxu1 %v2290_v17  ;;  %p2491_p6 = pnand %p2490_p5, %p2484_p2 }
 0x16a   :  { %1819 = vmatprep.subr.bf16.mxu0 %v2295_v18  ;;  %1862 = vmatprep.subr.bf16.mxu1 %v2298_v19 }
 0x16d   :  { %1820 = vmatpush1.bf16.msra.mxu0 %v2293_v20  ;;  %1863 = vmatpush1.bf16.msra.mxu1 %v2296_v30 }
 0x16e   :  { %1821 = vmatprep.subr.bf16.mxu0 %v2301_v32  ;;  %1864 = vmatprep.subr.bf16.mxu1 %v2304_v33 }
 0x171   :  { %1822 = vmatpush2.bf16.msra.mxu0 %v2299_v34  ;;  %1865 = vmatpush2.bf16.msra.mxu1 %v2302_v35 }
 0x172   :  { %1823 = vmatprep.subr.bf16.mxu0 %v2307_v36  ;;  %1866 = vmatprep.subr.bf16.mxu1 %v2310_v37 }
 0x175   :  { %1824 = vmatpush2.bf16.msra.mxu0 %v2305_v38  ;;  %1867 = vmatpush2.bf16.msra.mxu1 %v2308_v39 }
 0x176   :  { %1825 = vmatprep.subr.bf16.mxu0 %v2313_v40  ;;  %1868 = vmatprep.subr.bf16.mxu1 %v2316_v21 }
 0x179   :  { %1826 = vmatpush2.bf16.msra.mxu0 %v2311_v41  ;;  %1869 = vmatpush2.bf16.msra.mxu1 %v2314_v42 }
 0x17a   :  { %1827 = vmatprep.subr.bf16.mxu0 %v2319_v22  ;;  %1870 = vmatprep.subr.bf16.mxu1 %v2322_v43 }
 0x17d   :  { %1828 = vmatpush2.bf16.msra.mxu0 %v2317_v44  ;;  %1871 = vmatpush2.bf16.msra.mxu1 %v2320_v45 }
 0x17e   :  { %1829 = vmatprep.subr.bf16.mxu0 %v2325_v46  ;;  %1872 = vmatprep.subr.bf16.mxu1 %v2328_v47 }
 0x181   :  { %1830 = vmatpush2.bf16.msra.mxu0 %v2323_v23  ;;  %1873 = vmatpush2.bf16.msra.mxu1 %v2326_v48 }
 0x182   :  { %1831 = vmatprep.subr.bf16.mxu0 %v2331_v49  ;;  %1874 = vmatprep.subr.bf16.mxu1 %v2334_v50 }
 0x185   :  { %1832 = vmatpush2.bf16.msra.mxu0 %v2329_v51  ;;  %1875 = vmatpush2.bf16.msra.mxu1 %v2332_v24 }
 0x186   :  { %1833 = vmatprep.subr.bf16.mxu0 %v2337_v52  ;;  %1876 = vmatprep.subr.bf16.mxu1 %v2340_v10 }
 0x189   :  { %1834 = vmatpush2.bf16.msra.mxu0 %v2335_v53  ;;  %1877 = vmatpush2.bf16.msra.mxu1 %v2338_v25 }
 0x18a   :  { %1835 = vmatprep.subr.bf16.mxu0 %v2343_v54  ;;  %1878 = vmatprep.subr.bf16.mxu1 %v2346_v55 }
 0x18d   :  { %1836 = vmatpush2.bf16.msra.mxu0 %v2341_v26  ;;  %1879 = vmatpush2.bf16.msra.mxu1 %v2344_v56 }
 0x190   :  { %1838 = vmatmul.mubr.bf16.vlgmr.msra.gmra.mxu0 %v2662_v62  ;;  %1881 = vmatmul.mubr.bf16.vlgmr.msra.gmra.mxu1 %v2664_v28 }
 0x210   :  { %v1753_v57 = vpop.f32.mrf.mxu0  ;;  %v1796_v58 = vpop.f32.mrf.mxu1 }
 0x211   :  { %v1754_v12 = vadd.f32 %v1753_v57, %v1072_v11 }
 0x212   :  { %v1755_v60 = vpop.f32.mrf.mxu0  ;;  %v1798_v27 = vpop.f32.mrf.mxu1 }
 0x213   :  { %v1756_v62 = vadd.f32 %v1755_v60, %v1076_v61  ;;  %v1797_v28 = vadd.f32 %v1796_v58, %v1754_v12 }
 0x214   :  { %v1757_v63 = vpop.f32.mrf.mxu0  ;;  %v1800_v1 = vpop.f32.mrf.mxu1 }
 0x215   :  { %v1758_v3 = vadd.f32 %v1757_v63, %v1072_v11  ;;  %v1799_v7 = vadd.f32 %v1798_v27, %v1756_v62 }
 0x216   :  { %v1759_v2 = vpop.f32.mrf.mxu0  ;;  %v1802_v4 = vpop.f32.mrf.mxu1 }
 0x217   :  { %v1760_v8 = vadd.f32 %v1759_v2, %v1076_v61  ;;  %v1801_v14 = vadd.f32 %v1800_v1, %v1758_v3 }
 0x219   :  { %v1803_v29 = vadd.f32 %v1802_v4, %v1760_v8 }
 0x250   :  { %v1839_v5 = vpop.f32.mrf.mxu0  ;;  %v1882_v0 = vpop.f32.mrf.mxu1 }
 0x251   :  { %v1840_v9 = vadd.f32 %v1839_v5, %v1797_v28 }
 0x252   :  { %v1841_v13 = vpop.f32.mrf.mxu0  ;;  %v1884_v16 = vpop.f32.mrf.mxu1 }
 0x253   :  { %v1883_v31 = vadd.f32 %v1882_v0, %v1840_v9  ;;  %v1842_v15 = vadd.f32 %v1841_v13, %v1799_v7 }
 0x254   :  { %v1843_v6 = vpop.f32.mrf.mxu0  ;;  %v1886_v20 = vpop.f32.mrf.mxu1 }
 0x255   :  { %v1891_v17 = vsub.f32 0.0, %v1883_v31  ;;  %v1885_v18 = vadd.f32 %v1884_v16, %v1842_v15  ;;  %v1844_v19 = vadd.f32 %v1843_v6, %v1801_v14 }
 0x256   :  { %v1845_v30 = vpop.f32.mrf.mxu0  ;;  %v1888_v36 = vpop.f32.mrf.mxu1 }
 0x257   :  { %v1895_v32 = vmul.f32 1.442695, %v1891_v17  ;;  %v1892_v33 = vsub.f32 0.0, %v1885_v18  ;;  %v1887_v34 = vadd.f32 %v1886_v20, %v1844_v19  ;;  %v1846_v35 = vadd.f32 %v1845_v30, %v1803_v29 }
 0x259   :  { %2347 = vpow2.f32 %v1895_v32  ;;  %v1897_v37 = vmul.f32 1.442695, %v1892_v33  ;;  %v1893_v38 = vsub.f32 0.0, %v1887_v34  ;;  %v1889_v39 = vadd.f32 %v1888_v36, %v1846_v35 }
 0x25b   :  { %2349 = vpow2.f32 %v1897_v37  ;;  %v1899_v40 = vmul.f32 1.442695, %v1893_v38  ;;  %v1894_v21 = vsub.f32 0.0, %v1889_v39 }
 0x25d   :  { %2351 = vpow2.f32 %v1899_v40  ;;  %v1901_v41 = vmul.f32 1.442695, %v1894_v21 }
 0x25f   :  { %2353 = vpow2.f32 %v1901_v41 }
 0x266   :  { %v2348_v42 = vpop.eup %2347 }
 0x267   :  { %v1903_v22 = vadd.f32 1.0, %v2348_v42 }
 0x268   :  { %v2350_v43 = vpop.eup %2349 }
 0x269   :  { %2355 = vrcp.f32 %v1903_v22  ;;  %v1904_v44 = vadd.f32 1.0, %v2350_v43 }
 0x26a   :  { %v2352_v45 = vpop.eup %2351 }
 0x26b   :  { %2357 = vrcp.f32 %v1904_v44  ;;  %v1905_v46 = vadd.f32 1.0, %v2352_v45 }
 0x26c   :  { %v2354_v47 = vpop.eup %2353 }
 0x26d   :  { %2359 = vrcp.f32 %v1905_v46  ;;  %v1906_v23 = vadd.f32 1.0, %v2354_v47 }
 0x26f   :  { %2361 = vrcp.f32 %v1906_v23 }
 0x276   :  { %v2356_v48 = vpop.eup %2355 }
 0x277   :  { %1911 = vst [vmem:[#allocation13] sm:$0xff] %v2356_v48 }
 0x278   :  { %v2358_v49 = vpop.eup %2357 }
 0x279   :  { %1912 = vst [vmem:[#allocation13 + $0x8] sm:$0xff] %v2358_v49 }
 0x27a   :  { %v2360_v50 = vpop.eup %2359 }
 0x27b   :  { %1913 = vst [vmem:[#allocation13 + $0x10] sm:$0xff] %v2360_v50 }
 0x27c   :  { %v2362_v51 = vpop.eup %2361 }
 0x27d   :  { %1914 = vst [vmem:[#allocation13 + $0x18] sm:$0xff] %v2362_v51 }
 0x27e   :  { %2494 = shalt.err (!%p2491_p6)
}
 0x27f   :  { %s2527_s12 = smov 256   ;;  %s2528_s13 = smov 16  }
 0x280   :  { %1926 = dma.vmem_to_hbm [thread:$0]  %s1921_s10, 512, %s2685_s7, [#allocation4], %s2527_s12, %s2527_s12, %s2528_s13  }
 0x281   :  { %2511 = dma.done.wait [#allocation4], 512  }
 0x282   :  { %2512 = vsyncadd [#allocation4], 4294966784 }
 0x283   :  { %1930 = vsyncpa [#allocation3], 1 }
 0x284   :  { %1931 = vsyncpa [#allocation6], 1 }
 0x285   :  { %1932 = vsyncpa [#allocation9], 1 }
 0x286   :  { %1933 = vsyncpa [#allocation12], 1 }
 0x287   :  { %1934 = vsyncpa [#allocation4], 1 }

</bundles_post_ra>
